<compile_context>
chip_gen: v5e
topology: v5e:2x2
jax: 0.10.0
libtpu: 0.0.40
codegen_flags: <defaults>
</compile_context>

<pallas_src>
import functools

import jax
import jax.numpy as jnp
from jax import lax
from jax.experimental import pallas as pl
from jax.experimental.pallas import tpu as pltpu


def _seq_ce_kernel(x_ref, tgt_ref, out_ref, acc_ref, *, inv_batch):
    """Grid step (shard s, tile j): accumulate masked NLL for tile_rows rows."""
    j = pl.program_id(1)

    @pl.when(j == 0)
    def _():
        acc_ref[...] = jnp.zeros_like(acc_ref)

    # TODO(synk): keep the max / one-hot passes in bf16 on v6e/v7x when logits
    # arrive as bf16 (bf16 VALU there); single f32 upcast everywhere for now.
    x = x_ref[...].astype(jnp.float32)                      # (tr, C)
    tgt = tgt_ref[...]                                      # (tr, 1) int32; -1 == pad/masked

    # One traversal of the shifted tile: both lane reductions reuse xs.
    m = jnp.max(x, axis=-1, keepdims=True)                  # (tr, 1)
    xs = x - m                                              # (tr, C)
    sumexp = jnp.sum(jnp.exp(xs), axis=-1, keepdims=True)   # (tr, 1)
    # gather xs[row, tgt[row]] via one-hot compare (VPU-friendly, no XLU gather);
    # tgt == -1 never matches. NOTE: out-of-range targets (>= C) contribute
    # log(sumexp) instead of torch.gather's behavior (documented divergence).
    cls = lax.broadcasted_iota(jnp.int32, xs.shape, 1)      # (tr, C)
    xs_t = jnp.sum(jnp.where(cls == tgt, xs, 0.0), axis=-1, keepdims=True)
    nll = jnp.log(sumexp) - xs_t                            # (tr, 1)

    # Select (not multiply) so garbage rows of a partial / dummy block are inert.
    acc_ref[...] += jnp.where(tgt >= 0, nll, 0.0)

    @pl.when(j == pl.num_programs(1) - 1)
    def _():
        # one cross-sublane reduce per shard + sample_normalize (1/B)
        partial = jnp.sum(acc_ref[...]) * inv_batch
        out_ref[...] = jnp.zeros_like(out_ref) + partial


def _vmem_capacity_bytes():
    try:
        return int(pltpu.get_tpu_info().vmem_capacity_bytes)
    except Exception:
        return 64 * 1024 * 1024          # conservative (v7x per-core) fallback


def _pick_tile_rows(n_rows, c_lanes, itemsize, vmem_cap):
    """Largest row tile whose logit buffer fits ~vmem_cap/10 (double-buffered)."""
    mult = 16 if itemsize < 4 else 8     # bf16 min sublane tile is (16, 128)
    budget = max(6 * 1024 * 1024, vmem_cap // 10)   # ~12.8 MiB v5e/v6e, ~6.4 MiB v7x
    rows = budget // (c_lanes * itemsize)
    rows = max(mult, (rows // mult) * mult)
    rows = min(rows, 2048)               # diminishing returns past ~1-2k rows
    needed = ((n_rows + mult - 1) // mult) * mult
    return max(min(rows, needed), mult)


def seq_cross_entropy_loss(logits, target, length, *, tile_rows=None, num_shards=2):
    """Pallas implementation of SeqCrossEntropyLoss.forward (default flags)."""
    B, T, C = logits.shape
    N = B * T

    x = logits.reshape(N, C)             # view-like reshape; logits never copied in HBM

    # fold pad mask (t < length[b]) into the target stream: invalid rows -> -1
    pos = jnp.arange(T, dtype=jnp.int32)[None, :]                    # (1, T)
    valid = pos < length[:, None].astype(jnp.int32)                  # (B, T)
    tgt = jnp.where(valid, target.astype(jnp.int32), -1).reshape(N, 1)

    c_lanes = ((C + 127) // 128) * 128   # lane footprint of one logit row in VMEM
    itemsize = jnp.dtype(x.dtype).itemsize
    vmem_cap = _vmem_capacity_bytes()
    if tile_rows is None:
        tile_rows = _pick_tile_rows(N, c_lanes, itemsize, vmem_cap)

    real_tiles = -(-N // tile_rows)
    num_shards = max(1, min(num_shards, real_tiles))
    tiles_per_shard = -(-real_tiles // num_shards)
    grid_tiles = tiles_per_shard * num_shards

    # pad ONLY the tiny (N, 1) target stream to the grid size; pads are -1.
    pad_rows = grid_tiles * tile_rows - N
    if pad_rows:
        tgt = jnp.pad(tgt, ((0, pad_rows), (0, 0)), constant_values=-1)

    last_block = real_tiles - 1

    def x_index(s, j):
        # interleave tiles across shards (tail-balanced between v7x cores) and
        # clamp dummy tail tiles onto the last real block — their target rows
        # are -1, so they contribute nothing and never read out of bounds.
        return (jnp.minimum(j * num_shards + s, last_block), 0)

    def tgt_index(s, j):
        return (j * num_shards + s, 0)

    # explicit VMEM limit from the tile footprint, >= 8 MiB headroom vs capacity
    logit_buf = tile_rows * c_lanes * itemsize
    tgt_buf = tile_rows * 128 * 4        # (tr, 1) int32, lane-padded
    out_buf = 8 * 128 * 4
    acc_buf = tile_rows * 128 * 4
    est = 2 * (logit_buf + tgt_buf + out_buf) + acc_buf + (2 << 20)
    vmem_limit = int(min(max(2 * est, 32 << 20), vmem_cap - (8 << 20)))

    kernel = functools.partial(_seq_ce_kernel, inv_batch=1.0 / B)

    out = pl.pallas_call(
        kernel,
        out_shape=jax.ShapeDtypeStruct((num_shards * 8, 128), jnp.float32),
        grid_spec=pltpu.PrefetchScalarGridSpec(
            num_scalar_prefetch=0,
            grid=(num_shards, tiles_per_shard),
            in_specs=[
                pl.BlockSpec((tile_rows, C), x_index),     # full-extent class axis, no pad
                pl.BlockSpec((tile_rows, 1), tgt_index),
            ],
            out_specs=pl.BlockSpec((8, 128), lambda s, j: (s, 0)),
            scratch_shapes=[pltpu.VMEM((tile_rows, 1), jnp.float32)],
        ),
        compiler_params=pltpu.CompilerParams(
            # TODO(synk): on v7x switch the shard axis to pltpu.CORE_PARALLEL if an
            # xprof trace shows the second TensorCore idle under plain "parallel".
            dimension_semantics=("parallel", "arbitrary"),
            vmem_limit_bytes=vmem_limit,
        ),
    )(x, tgt)

    # each shard wrote its (already 1/B-scaled) partial replicated over an
    # (8, 128) block; pick one element per shard and sum.
    return jnp.sum(out[::8, 0])


def _reference(logits, target, length):
    B, T, C = logits.shape
    logp = jax.nn.log_softmax(logits.astype(jnp.float32), axis=-1)
    picked = jnp.take_along_axis(logp, target[..., None].astype(jnp.int32),
                                 axis=-1)[..., 0]                    # (B, T)
    mask = (jnp.arange(T)[None, :] < length[:, None]).astype(jnp.float32)
    return jnp.sum(-picked * mask) / B


if __name__ == "__main__":
    key = jax.random.PRNGKey(0)

    # Case 1: small shapes matching the module's typical use (B, T, C).
    B, T, C = 2, 8, 32
    k1, k2, k3, k4 = jax.random.split(key, 4)
    logits = jax.random.normal(k1, (B, T, C), dtype=jnp.float32)
    target = jax.random.randint(k2, (B, T), 0, C, dtype=jnp.int32)
    length = jnp.array([8, 5], dtype=jnp.int32)

    loss = jax.block_until_ready(seq_cross_entropy_loss(logits, target, length))
    ref = _reference(logits, target, length)
    assert jnp.allclose(loss, ref, rtol=1e-5, atol=1e-5), (loss, ref)

    # Case 2: exercises partial last block, non-128-multiple class dim,
    # multi-tile accumulation, shard interleave and the dummy-tile clamp.
    B2, T2, C2 = 3, 7, 200
    logits2 = jax.random.normal(k3, (B2, T2, C2), dtype=jnp.float32)
    target2 = jax.random.randint(k4, (B2, T2), 0, C2, dtype=jnp.int32)
    length2 = jnp.array([7, 4, 2], dtype=jnp.int32)

    loss2 = jax.block_until_ready(
        seq_cross_entropy_loss(logits2, target2, length2, tile_rows=8, num_shards=2))
    ref2 = _reference(logits2, target2, length2)
    assert jnp.allclose(loss2, ref2, rtol=1e-5, atol=1e-5), (loss2, ref2)

    print("KERNEL_OK")
</pallas_src>

<mosaic_0001>
module attributes {stable_mosaic.version = 11 : i64} {
  func.func @_seq_ce_kernel(%arg0: i32, %arg1: i32, %arg2: memref<16x32xf32, #tpu.memory_space<vmem>>, %arg3: memref<16x1xi32, #tpu.memory_space<vmem>>, %arg4: memref<8x128xf32, #tpu.memory_space<vmem>>, %arg5: memref<16x1xf32, #tpu.memory_space<vmem>>) attributes {dimension_semantics = [#tpu.dimension_semantics<parallel>, #tpu.dimension_semantics<arbitrary>], iteration_bounds = array<i64: 1, 1>, scalar_prefetch = 0 : i64, scratch_operands = 1 : i64, tpu.core_type = #tpu.core_type<tc>, window_params = [{transform_indices = @transform_0, window_bounds = array<i64: 16, 32>}, {transform_indices = @transform_1, window_bounds = array<i64: 16, 1>}, {transform_indices = @transform_2, window_bounds = array<i64: 8, 128>}]} {
    %c0_i32 = arith.constant 0 : i32
    %0 = arith.cmpi eq, %arg1, %c0_i32 : i32
    %1 = arith.extui %0 : i1 to i32
    %c0_i32_0 = arith.constant 0 : i32
    %2 = arith.cmpi ne, %1, %c0_i32_0 : i32
    scf.if %2 {
      %cst_15 = arith.constant 0.000000e+00 : f32
      %31 = vector.broadcast %cst_15 : f32 to vector<16x1xf32>
      %c0_16 = arith.constant 0 : index
      %c0_17 = arith.constant 0 : index
      %32 = vector.load %arg5[%c0_16, %c0_17] : memref<16x1xf32, #tpu.memory_space<vmem>>, vector<16x1xf32>
      tpu.vector_store %arg5[%c0_16, %c0_17], %31 {strides = array<i32>} : memref<16x1xf32, #tpu.memory_space<vmem>>, vector<16x1xf32>,
    } else {
    }
    %c0 = arith.constant 0 : index
    %c0_1 = arith.constant 0 : index
    %3 = vector.load %arg2[%c0, %c0_1] : memref<16x32xf32, #tpu.memory_space<vmem>>, vector<16x32xf32>
    %c0_2 = arith.constant 0 : index
    %c0_3 = arith.constant 0 : index
    %4 = vector.load %arg3[%c0_2, %c0_3] : memref<16x1xi32, #tpu.memory_space<vmem>>, vector<16x1xi32>
    %cst = arith.constant dense<0xFF800000> : vector<16xf32>
    %5 = vector.multi_reduction <maximumf>, %3, %cst [1] : vector<16x32xf32> to vector<16xf32>
    %6 = vector.shape_cast %5 : vector<16xf32> to vector<16x1xf32>
    %7 = vector.broadcast %6 : vector<16x1xf32> to vector<16x32xf32>
    %8 = arith.subf %3, %7 : vector<16x32xf32>
    %9 = math.exp %8 : vector<16x32xf32>
    %cst_4 = arith.constant dense<0.000000e+00> : vector<16xf32>
    %10 = vector.multi_reduction <add>, %9, %cst_4 [1] : vector<16x32xf32> to vector<16xf32>
    %11 = vector.shape_cast %10 : vector<16xf32> to vector<16x1xf32>
    %12 = tpu.iota {dimensions = array<i32: 1>} : vector<16x32xi32>
    %13 = vector.broadcast %4 : vector<16x1xi32> to vector<16x32xi32>
    %14 = arith.cmpi eq, %12, %13 : vector<16x32xi32>
    %cst_5 = arith.constant 0.000000e+00 : f32
    %15 = vector.broadcast %cst_5 : f32 to vector<16x32xf32>
    %16 = arith.select %14, %8, %15 : vector<16x32xi1>, vector<16x32xf32>
    %cst_6 = arith.constant dense<0.000000e+00> : vector<16xf32>
    %17 = vector.multi_reduction <add>, %16, %cst_6 [1] : vector<16x32xf32> to vector<16xf32>
    %18 = vector.shape_cast %17 : vector<16xf32> to vector<16x1xf32>
    %19 = math.log %11 : vector<16x1xf32>
    %20 = arith.subf %19, %18 : vector<16x1xf32>
    %c0_7 = arith.constant 0 : index
    %c0_8 = arith.constant 0 : index
    %21 = vector.load %arg5[%c0_7, %c0_8] : memref<16x1xf32, #tpu.memory_space<vmem>>, vector<16x1xf32>
    %c0_i32_9 = arith.constant 0 : i32
    %22 = vector.broadcast %c0_i32_9 : i32 to vector<16x1xi32>
    %23 = arith.cmpi sge, %4, %22 : vector<16x1xi32>
    %cst_10 = arith.constant 0.000000e+00 : f32
    %24 = vector.broadcast %cst_10 : f32 to vector<16x1xf32>
    %25 = arith.select %23, %20, %24 : vector<16x1xi1>, vector<16x1xf32>
    %26 = arith.addf %21, %25 : vector<16x1xf32>
    %c0_11 = arith.constant 0 : index
    %c0_12 = arith.constant 0 : index
    %27 = vector.load %arg5[%c0_11, %c0_12] : memref<16x1xf32, #tpu.memory_space<vmem>>, vector<16x1xf32>
    tpu.vector_store %arg5[%c0_11, %c0_12], %26 {strides = array<i32>} : memref<16x1xf32, #tpu.memory_space<vmem>>, vector<16x1xf32>,
    %c0_i32_13 = arith.constant 0 : i32
    %28 = arith.cmpi eq, %arg1, %c0_i32_13 : i32
    %29 = arith.extui %28 : i1 to i32
    %c0_i32_14 = arith.constant 0 : i32
    %30 = arith.cmpi ne, %29, %c0_i32_14 : i32
    scf.if %30 {
      %c0_15 = arith.constant 0 : index
      %c0_16 = arith.constant 0 : index
      %31 = vector.load %arg5[%c0_15, %c0_16] : memref<16x1xf32, #tpu.memory_space<vmem>>, vector<16x1xf32>
      %32 = vector.shape_cast %31 : vector<16x1xf32> to vector<1x16x1xf32>
      %cst_17 = arith.constant dense<0.000000e+00> : vector<1xf32>
      %33 = vector.multi_reduction <add>, %32, %cst_17 [1, 2] : vector<1x16x1xf32> to vector<1xf32>
      %34 = vector.shape_cast %33 : vector<1xf32> to vector<1x1x1xf32>
      %35 = vector.extract %34[0, 0, 0] : f32 from vector<1x1x1xf32>
      %cst_18 = arith.constant 5.000000e-01 : f32
      %36 = arith.mulf %35, %cst_18 : f32
      %cst_19 = arith.constant 0.000000e+00 : f32
      %37 = vector.broadcast %cst_19 : f32 to vector<8x128xf32>
      %38 = vector.broadcast %36 : f32 to vector<8x128xf32>
      %39 = arith.addf %37, %38 : vector<8x128xf32>
      %c0_20 = arith.constant 0 : index
      %c0_21 = arith.constant 0 : index
      %40 = vector.load %arg4[%c0_20, %c0_21] : memref<8x128xf32, #tpu.memory_space<vmem>>, vector<8x128xf32>
      tpu.vector_store %arg4[%c0_20, %c0_21], %39 {strides = array<i32>} : memref<8x128xf32, #tpu.memory_space<vmem>>, vector<8x128xf32>,
    } else {
    }
    return
  }
  func.func @transform_0(%arg0: i32, %arg1: i32) -> (i32, i32) {
    %c1_i32 = arith.constant 1 : i32
    %0 = arith.muli %arg1, %c1_i32 : i32
    %1 = arith.addi %0, %arg0 : i32
    %c0_i32 = arith.constant 0 : i32
    %2 = arith.minsi %1, %c0_i32 : i32
    %c0_i32_0 = arith.constant 0 : i32
    %c0_i32_1 = arith.constant 0 : i32
    return %2, %c0_i32_0 : i32, i32
  }
  func.func @transform_1(%arg0: i32, %arg1: i32) -> (i32, i32) {
    %c1_i32 = arith.constant 1 : i32
    %0 = arith.muli %arg1, %c1_i32 : i32
    %1 = arith.addi %0, %arg0 : i32
    %c0_i32 = arith.constant 0 : i32
    %c0_i32_0 = arith.constant 0 : i32
    return %1, %c0_i32 : i32, i32
  }
  func.func @transform_2(%arg0: i32, %arg1: i32) -> (i32, i32) {
    %c0_i32 = arith.constant 0 : i32
    %c0_i32_0 = arith.constant 0 : i32
    return %arg0, %c0_i32 : i32, i32
  }
}

</mosaic_0001>

<bundles_post_ra>
// kernel: tpu_custom_call.1
= control target key start
LH: loop header
LB: loop body
LE: loop exit
PB: predicated region body
PF: predicated region fallthrough
CT: control target
= control target key end

     0   :  { %vm77_vm0 = vcmask 261120   ;;  %v221_v3 = vmov 0   ;;  %s266_s0 = inlined_call_operand.vmem [shape: f32[16,32], index: 0, kind: input, shape index: {}]   ;;  %s267_s1 = inlined_call_operand.vmem [shape: s32[16,1], index: 1, kind: input, shape index: {}]   ;;  %s268_s2 = inlined_call_operand.hbm [shape: f32[8,128], index: 2, kind: output, shape index: {}]  }
   0x1   :  { %v73_v0 = vld [vmem:[%s266_s0] sm:$0xff]  ;;  %185 = vset.pattern.permute.xlu1 %v221_v3  ;;  %186 = vset.pattern.permute.xlu0 %v221_v3 }
   0x2   :  { %v75_v1 = vld [vmem:[%s267_s1] sm:$0xff]  ;;  %v78_v2 = vsel %vm77_vm0, %v73_v0, -inf }
   0x3   :  { %7 = vsyncpa [#allocation4], 0  ;;  %79 = vmax.xlane.f32.xlu0 %v78_v2  ;;  %99 = vperm.xlu1 %185, %v75_v1   ;;  %v74_v4 = vld [vmem:[%s266_s0 + $0x8] sm:$0xff]  ;;  %v96_v7 = vlaneseq  ;;  %vm70_vm3 = vcmask 7168   ;;  %v222_v25 = vmov 0.0   ;;  %vm122_vm4 = vcmp.ge.s32.totalorder %v75_v1, 0 }
   0x4   :  { %v81_v5 = vsel %vm77_vm0, %v74_v4, -inf  ;;  %v76_v6 = vld [vmem:[%s267_s1 + $0x8] sm:$0xff]  ;;  %71 = vst.msk [vmem:[#allocation2] sm:$0xff] %vm70_vm3, %v222_v25  ;;  %s223_s0 = smov [#allocation3]   ;;  %s159_s19 = sshll.u32 %s268_s2, 4  ;;  %s160_s19 = int_to_ptr.hbm [resolvable:$true] %s159_s19 }
   0x5   :  { %v97_v8 = vand.u32 127, %v96_v7  ;;  %72 = vst.msk [vmem:[#allocation2 + $0x8] sm:$0xff] %vm70_vm3, %v222_v25  ;;  %vm123_vm5 = vcmp.ge.s32.totalorder %v76_v6, 0  ;;  %s157_s1 = sshll.u32 %s223_s0, 4  ;;  %s158_s1 = int_to_ptr.vmem [resolvable:$true] %s157_s1 }
   0xb   :  { %82 = vmax.xlane.f32.xlu0 %v81_v5  ;;  %102 = vperm.xlu1 %185, %v76_v6   ;;  %v120_v32 = vld [vmem:[#allocation2] sm:$0xff] }
   0xc   :  { %v121_v39 = vld [vmem:[#allocation2 + $0x8] sm:$0xff] }
  0x75   :  { %v100_v9 = vpop.permute.xlu1 %99 }
  0x76   :  { %v80_v10 = vpop.xlane.xlu0 %79  ;;  %vm104_vm1 = vcmp.eq.s32.totalorder %v97_v8, %v100_v9 }
  0x77   :  { %v84_v11 = vsub.f32 %v73_v0, %v80_v10 }
  0x79   :  { %v86_v12 = vmul.f32 1.442695, %v84_v11  ;;  %v106_v13 = vsel %vm104_vm1, %v84_v11, 0.0 }
  0x7a   :  { %v108_v14 = vsel %vm77_vm0, %v106_v13, 0.0 }
  0x7b   :  { %187 = vpow2.f32 %v86_v12  ;;  %109 = vadd.xlane.f32.xlu0 %v108_v14 }
  0x7d   :  { %v103_v15 = vpop.permute.xlu1 %102 }
  0x7e   :  { %v83_v16 = vpop.xlane.xlu0 %82  ;;  %vm105_vm2 = vcmp.eq.s32.totalorder %v97_v8, %v103_v15 }
  0x7f   :  { %v85_v17 = vsub.f32 %v74_v4, %v83_v16 }
  0x81   :  { %v188_v18 = vpop.eup %187  ;;  %v88_v19 = vmul.f32 1.442695, %v85_v17  ;;  %v107_v20 = vsel %vm105_vm2, %v85_v17, 0.0 }
  0x82   :  { %v90_v21 = vsel %vm77_vm0, %v188_v18, 0.0  ;;  %v111_v22 = vsel %vm77_vm0, %v107_v20, 0.0 }
  0x83   :  { %189 = vpow2.f32 %v88_v19  ;;  %91 = vadd.xlane.f32.xlu2 %v90_v21  ;;  %112 = vadd.xlane.f32.xlu1 %v111_v22 }
  0x89   :  { %v190_v23 = vpop.eup %189 }
  0x8a   :  { %v93_v24 = vsel %vm77_vm0, %v190_v23, 0.0 }
  0x8b   :  { %94 = vadd.xlane.f32.xlu2 %v93_v24 }
  0xee   :  { %v110_v30 = vpop.xlane.xlu0 %109 }
  0xf6   :  { %v92_v26 = vpop.xlane.xlu2 %91  ;;  %v113_v37 = vpop.xlane.xlu1 %112 }
  0xf7   :  { %191 = vlog2.f32 %v92_v26 }
  0xfd   :  { %v192_v27 = vpop.eup %191 }
  0xfe   :  { %v115_v28 = vmul.f32 0.6931472, %v192_v27  ;;  %v95_v29 = vpop.xlane.xlu2 %94 }
  0xff   :  { %193 = vlog2.f32 %v95_v29 }
 0x100   :  { %v118_v31 = vsub.f32 %v115_v28, %v110_v30 }
 0x102   :  { %v124_v33 = vsel %vm122_vm4, %v118_v31, 0.0 }
 0x103   :  { %v126_v34 = vadd.f32 %v124_v33, %v120_v32 }
 0x105   :  { %v194_v35 = vpop.eup %193  ;;  %129 = vst.msk [vmem:[#allocation2] sm:$0xff] %vm70_vm3, %v126_v34 }
 0x106   :  { %v117_v36 = vmul.f32 0.6931472, %v194_v35 }
 0x108   :  { %v119_v38 = vsub.f32 %v117_v36, %v113_v37 }
 0x10a   :  { %v125_v40 = vsel %vm123_vm5, %v119_v38, 0.0 }
 0x10b   :  { %v127_v41 = vadd.f32 %v125_v40, %v121_v39 }
 0x10c   :  { %v134_v42 = vld [vmem:[#allocation2] sm:$0xff] }
 0x10d   :  { %130 = vst.msk [vmem:[#allocation2 + $0x8] sm:$0xff] %vm70_vm3, %v127_v41  ;;  %v136_v44 = vsel %vm70_vm3, %v134_v42, 0.0 }
 0x114   :  { %v135_v43 = vld [vmem:[#allocation2 + $0x8] sm:$0xff] }
 0x115   :  { %v137_v45 = vsel %vm70_vm3, %v135_v43, 0.0 }
 0x116   :  { %v138_v46 = vadd.f32 %v137_v45, %v136_v44 }
 0x118   :  { %139 = vadd.xlane.f32.xlu2 %v138_v46 }
 0x18b   :  { %v140_v47 = vpop.xlane.xlu2 %139 }
 0x18c   :  { %v141_v48 = vrot.slane %v140_v47, 4 }
 0x18e   :  { %v142_v49 = vadd.f32 %v141_v48, %v140_v47 }
 0x190   :  { %v143_v50 = vrot.slane %v142_v49, 2 }
 0x192   :  { %v144_v51 = vadd.f32 %v143_v50, %v142_v49 }
 0x194   :  { %v145_v52 = vrot.slane %v144_v51, 1 }
 0x196   :  { %v146_v53 = vadd.f32 %v145_v52, %v144_v51 }
 0x198   :  { %180 = vpush %v146_v53 }
 0x1c9   :  { %s181_s20 = spop %180 }
 0x1ca   :  { %s148_s21 = smul.f32 0.5, %s181_s20 }
 0x1cc   :  { %v149_v54 = vstv %s148_s21 }
 0x1cd   :  { %151 = vst [vmem:[#allocation3] sm:$0xff] %v149_v54 }
 0x1ce   :  { %162 = dma.vmem_to_hbm [thread:$0]  %s158_s1, 128, %s160_s19, [#allocation4]  }
 0x1cf   :  { %219 = dma.done.wait [#allocation4], 128  }
 0x1d0   :  { %220 = vsyncadd [#allocation4], 4294967168 }
 0x1d1   :  { %167 = vsyncpa [#allocation4], 1 }

</bundles_post_ra>
